<compile_context>
chip_gen: v7x
topology: tpu7x:2x2x1
jax: 0.10.0
libtpu: 0.0.40
codegen_flags: <defaults>
</compile_context>

<pallas_src>
import jax
import jax.numpy as jnp
from jax.experimental import pallas as pl
from jax.experimental.pallas import tpu as pltpu


def _proj_mlp_kernel(x_ref, w1_ref, g_ref, beta_ref, w2_ref, b2_ref, o_ref,
                     x_bf_ref):
    k = pl.program_id(1)  # hidden (fc2 reduction) axis

    @pl.when(k == 0)
    def _init():
        # Cast x to bf16 once per output tile (x block is resident; this avoids a
        # separate wrapper-level astype that would re-read/write x through HBM).
        x_bf_ref[...] = x_ref[...].astype(jnp.bfloat16)
        # Output block is resident across k: start the accumulator from fc2 bias.
        o_ref[...] = jnp.broadcast_to(b2_ref[...], o_ref.shape)

    # ---- fc1 on this hidden-column tile (bf16 MXU operands, f32 accumulation).
    # fc1 bias omitted: training-mode BatchNorm subtracts the batch mean right
    # after, which cancels any per-column pre-BN bias exactly.
    h = jnp.dot(x_bf_ref[...], w1_ref[...], preferred_element_type=jnp.float32)

    # ---- BatchNorm1d (training mode: batch mean, biased variance, eps=1e-5).
    # Two-pass variance for numerical safety; the extra VPU pass hides under MXU.
    inv_n = 1.0 / h.shape[0]
    mean = jnp.sum(h, axis=0, keepdims=True) * inv_n
    hc = h - mean
    var = jnp.sum(hc * hc, axis=0, keepdims=True) * inv_n
    scale = g_ref[...] * jax.lax.rsqrt(var + 1e-5)

    # ---- affine + ReLU
    h_act = jnp.maximum(hc * scale + beta_ref[...], 0.0)

    # ---- fc2 partial product for this hidden tile, accumulated in-place in o_ref.
    o_ref[...] += jnp.dot(h_act.astype(w2_ref.dtype), w2_ref[...],
                          preferred_element_type=jnp.float32)


def prepare_params(w1, gamma, beta, w2, b2):
    """One-time (persistent) parameter prep: bf16 MXU weights, 2-D f32 rows.

    Do this ONCE outside the training/inference step so no per-call casts
    (extra HBM read+write) are paid.
    """
    return dict(
        w1=w1.astype(jnp.bfloat16),                      # (in_dim, hidden) = fc1.weight.T
        gamma=gamma.reshape(1, -1).astype(jnp.float32),  # BatchNorm1d.weight
        beta=beta.reshape(1, -1).astype(jnp.float32),    # BatchNorm1d.bias
        w2=w2.astype(jnp.bfloat16),                      # (hidden, out_dim) = fc2.weight.T
        b2=b2.reshape(1, -1).astype(jnp.float32),        # fc2.bias
    )


def _vmem_estimate(n, in_dim, tile_h, tile_o):
    """Conservative per-step VMEM footprint (bytes), incl. f32 intermediates."""
    return (
        2 * n * in_dim * 4            # x f32 block (assume double-buffered)
        + n * in_dim * 2              # bf16 x scratch
        + 2 * in_dim * tile_h * 2     # w1 column tile x2 buffers (bf16)
        + 2 * tile_h * tile_o * 2     # w2 row tile x2 buffers (bf16)
        + 2 * n * tile_o * 4          # resident f32 output block (+slack)
        + 4 * n * tile_h * 4          # live f32 intermediates: h, h-mean, h_act, cast
        + 8 * tile_h * 4              # gamma/beta tiles (x2 buffers each)
        + 4 * tile_o * 4              # b2 tile x2 buffers
    )


def projection_mlp_forward(x, params, *, tile_h=None, num_out_tiles=1):
    """Fused projection-MLP forward (training-mode BatchNorm).

    x:      (N, in_dim) float32
    params: dict from prepare_params() -- w1/w2 already bf16, gamma/beta/b2 (1, D) f32.
    num_out_tiles: >1 splits out_dim over a leading 'parallel' grid axis
                   (use 2 on v7x to feed both TensorCores).
    Returns (N, out_dim) float32.
    """
    w1, gamma, beta, w2, b2 = (params["w1"], params["gamma"], params["beta"],
                               params["w2"], params["b2"])
    n, in_dim = x.shape
    hidden = w1.shape[1]
    out_dim = w2.shape[1]

    assert w1.dtype == jnp.bfloat16 and w2.dtype == jnp.bfloat16, (
        "pre-cast weights once with prepare_params(); do not cast per call")

    # Physical VMEM -> scoped budget with headroom (fallback assumes v7x's 64 MiB).
    try:
        phys_vmem = pltpu.get_tpu_info().vmem_capacity_bytes
    except Exception:
        phys_vmem = 64 << 20
    budget = int(phys_vmem * 0.70)

    assert out_dim % num_out_tiles == 0
    tile_o = out_dim // num_out_tiles
    assert tile_o % 128 == 0, (
        "pad W2/b2 columns so out_dim/num_out_tiles is a multiple of 128 "
        "(lane-dense output stores)")

    if tile_h is None:
        cands = [c for c in (1024, 512, 256, 128) if hidden % c == 0] or [hidden]
        tile_h = next((c for c in cands
                       if _vmem_estimate(n, in_dim, c, tile_o) <= budget),
                      cands[-1])
    assert hidden % tile_h == 0, "hidden must be divisible by tile_h"
    assert tile_h % 128 == 0 or tile_h == hidden, "(8,128) tiling constraint"

    est = _vmem_estimate(n, in_dim, tile_h, tile_o)
    vmem_limit = min(max(int(est * 1.5) + (4 << 20), 16 << 20), budget)

    grid = (num_out_tiles, hidden // tile_h)

    return pl.pallas_call(
        _proj_mlp_kernel,
        out_shape=jax.ShapeDtypeStruct((n, out_dim), jnp.float32),
        grid_spec=pltpu.PrefetchScalarGridSpec(
            num_scalar_prefetch=0,
            grid=grid,
            in_specs=[
                pl.BlockSpec((n, in_dim), lambda p, k: (0, 0)),       # x (resident, f32)
                pl.BlockSpec((in_dim, tile_h), lambda p, k: (0, k)),  # w1 column tile
                pl.BlockSpec((1, tile_h), lambda p, k: (0, k)),       # gamma tile
                pl.BlockSpec((1, tile_h), lambda p, k: (0, k)),       # beta tile
                pl.BlockSpec((tile_h, tile_o), lambda p, k: (k, p)),  # w2 row/col tile
                pl.BlockSpec((1, tile_o), lambda p, k: (0, p)),       # b2 column tile
            ],
            out_specs=pl.BlockSpec((n, tile_o), lambda p, k: (0, p)),
            scratch_shapes=[pltpu.VMEM((n, in_dim), jnp.bfloat16)],   # x cast once
        ),
        compiler_params=pltpu.CompilerParams(
            # leading axis: independent out_dim tiles (megacore-shardable on v7x);
            # trailing axis: fc2 reduction over hidden tiles.
            dimension_semantics=("parallel", "arbitrary"),
            vmem_limit_bytes=vmem_limit,
        ),
    )(x, w1, gamma, beta, w2, b2)


def _reference_forward(x, w1_bf, gamma, beta, w2_bf, b2):
    # Mirrors the kernel's bf16 MXU-operand rounding (f32 accumulation / BN math)
    # so the correctness check is tight.
    xf = x.astype(jnp.bfloat16).astype(jnp.float32)
    w1f = w1_bf.astype(jnp.float32)
    w2f = w2_bf.astype(jnp.float32)
    h = xf @ w1f
    mean = jnp.mean(h, axis=0, keepdims=True)
    var = jnp.mean((h - mean) ** 2, axis=0, keepdims=True)
    h = (h - mean) * jax.lax.rsqrt(var + 1e-5)
    h = h * gamma[None, :] + beta[None, :]
    h = jnp.maximum(h, 0.0)
    return h.astype(jnp.bfloat16).astype(jnp.float32) @ w2f + b2[None, :]


if __name__ == "__main__":
    # Small shapes consistent with the module, (8,128)-aligned / lane-dense.
    # (For real perf, batch N >= 256 to fill the 256-wide MXU on v6e/v7x.)
    N, IN_DIM, HIDDEN, OUT_DIM = 16, 128, 256, 256

    key = jax.random.PRNGKey(0)
    kx, kw1, kw2, kb2 = jax.random.split(key, 4)

    x = jax.random.normal(kx, (N, IN_DIM), dtype=jnp.float32)

    # Deterministic synthetic parameters (PyTorch-like fan-in uniform init).
    lim1 = 1.0 / jnp.sqrt(IN_DIM)
    w1 = jax.random.uniform(kw1, (IN_DIM, HIDDEN), jnp.float32, -lim1, lim1)
    gamma = jnp.ones((HIDDEN,), jnp.float32)   # BatchNorm1d weight init
    beta = jnp.zeros((HIDDEN,), jnp.float32)   # BatchNorm1d bias init
    lim2 = 1.0 / jnp.sqrt(HIDDEN)
    w2 = jax.random.uniform(kw2, (HIDDEN, OUT_DIM), jnp.float32, -lim2, lim2)
    b2 = jax.random.uniform(kb2, (OUT_DIM,), jnp.float32, -lim2, lim2)

    # One-time persistent parameter prep (bf16 weights, 2-D rows).
    params = prepare_params(w1, gamma, beta, w2, b2)

    # tile_h=128 -> 2 hidden reduction steps; num_out_tiles=2 -> exercises the
    # parallel out_dim axis (init/accumulate per output tile).
    out = projection_mlp_forward(x, params, tile_h=128, num_out_tiles=2)
    out = jax.block_until_ready(out)

    ref = _reference_forward(x, params["w1"], gamma, beta, params["w2"], b2)
    assert out.shape == (N, OUT_DIM)
    max_err = float(jnp.max(jnp.abs(out - ref)))
    assert jnp.allclose(out, ref, atol=1e-2, rtol=1e-2), (
        f"mismatch vs reference (max abs err {max_err})")

    print("KERNEL_OK")
</pallas_src>

<mosaic_0001>
module attributes {stable_mosaic.version = 11 : i64} {
  func.func @_proj_mlp_kernel(%arg0: i32, %arg1: i32, %arg2: memref<16x128xf32, #tpu.memory_space<vmem>>, %arg3: memref<128x128xbf16, #tpu.memory_space<vmem>>, %arg4: memref<1x128xf32, #tpu.memory_space<vmem>>, %arg5: memref<1x128xf32, #tpu.memory_space<vmem>>, %arg6: memref<128x128xbf16, #tpu.memory_space<vmem>>, %arg7: memref<1x128xf32, #tpu.memory_space<vmem>>, %arg8: memref<16x128xf32, #tpu.memory_space<vmem>>, %arg9: memref<16x128xbf16, #tpu.memory_space<vmem>>) attributes {dimension_semantics = [#tpu.dimension_semantics<parallel>, #tpu.dimension_semantics<arbitrary>], iteration_bounds = array<i64: 2, 2>, scalar_prefetch = 0 : i64, scratch_operands = 1 : i64, tpu.core_type = #tpu.core_type<tc>, window_params = [{pipeline_mode = #tpu.pipeline_mode<synchronous>, transform_indices = @transform_0, window_bounds = array<i64: 16, 128>}, {transform_indices = @transform_1, window_bounds = array<i64: 128, 128>}, {transform_indices = @transform_2, window_bounds = array<i64: 1, 128>}, {transform_indices = @transform_3, window_bounds = array<i64: 1, 128>}, {transform_indices = @transform_4, window_bounds = array<i64: 128, 128>}, {transform_indices = @transform_5, window_bounds = array<i64: 1, 128>}, {transform_indices = @transform_6, window_bounds = array<i64: 16, 128>}]} {
    %c0_i32 = arith.constant 0 : i32
    %0 = arith.cmpi eq, %arg1, %c0_i32 : i32
    %1 = arith.extui %0 : i1 to i32
    %c0_i32_0 = arith.constant 0 : i32
    %2 = arith.cmpi ne, %1, %c0_i32_0 : i32
    scf.if %2 {
      %c0_21 = arith.constant 0 : index
      %c0_22 = arith.constant 0 : index
      %35 = vector.load %arg2[%c0_21, %c0_22] : memref<16x128xf32, #tpu.memory_space<vmem>>, vector<16x128xf32>
      %36 = arith.truncf %35 : vector<16x128xf32> to vector<16x128xbf16>
      %c0_23 = arith.constant 0 : index
      %c0_24 = arith.constant 0 : index
      %37 = vector.load %arg9[%c0_23, %c0_24] : memref<16x128xbf16, #tpu.memory_space<vmem>>, vector<16x128xbf16>
      tpu.vector_store %arg9[%c0_23, %c0_24], %36 {strides = array<i32>} : memref<16x128xbf16, #tpu.memory_space<vmem>>, vector<16x128xbf16>,
      %c0_25 = arith.constant 0 : index
      %c0_26 = arith.constant 0 : index
      %38 = vector.load %arg7[%c0_25, %c0_26] : memref<1x128xf32, #tpu.memory_space<vmem>>, vector<1x128xf32>
      %39 = vector.shape_cast %38 : vector<1x128xf32> to vector<1x128xf32>
      %40 = vector.broadcast %39 : vector<1x128xf32> to vector<16x128xf32>
      %c0_27 = arith.constant 0 : index
      %c0_28 = arith.constant 0 : index
      %41 = vector.load %arg8[%c0_27, %c0_28] : memref<16x128xf32, #tpu.memory_space<vmem>>, vector<16x128xf32>
      tpu.vector_store %arg8[%c0_27, %c0_28], %40 {strides = array<i32>} : memref<16x128xf32, #tpu.memory_space<vmem>>, vector<16x128xf32>,
    } else {
    }
    %c0 = arith.constant 0 : index
    %c0_1 = arith.constant 0 : index
    %3 = vector.load %arg9[%c0, %c0_1] : memref<16x128xbf16, #tpu.memory_space<vmem>>, vector<16x128xbf16>
    %c0_2 = arith.constant 0 : index
    %c0_3 = arith.constant 0 : index
    %4 = vector.load %arg3[%c0_2, %c0_3] : memref<128x128xbf16, #tpu.memory_space<vmem>>, vector<128x128xbf16>
    %cst = arith.constant dense<0.000000e+00> : vector<16x128xf32>
    %5 = tpu.matmul %3, %4, %cst {dimension_numbers = #tpu.dot_dimension_numbers<[1], [0], [0], [1], [0, 0, 1, 1], [], []>} : vector<16x128xbf16>, vector<128x128xbf16>, vector<16x128xf32> -> vector<16x128xf32>
    %cst_4 = arith.constant dense<0.000000e+00> : vector<128xf32>
    %6 = vector.multi_reduction <add>, %5, %cst_4 [0] : vector<16x128xf32> to vector<128xf32>
    %7 = vector.shape_cast %6 : vector<128xf32> to vector<1x128xf32>
    %cst_5 = arith.constant 6.250000e-02 : f32
    %8 = vector.broadcast %cst_5 : f32 to vector<1x128xf32>
    %9 = arith.mulf %7, %8 : vector<1x128xf32>
    %10 = vector.broadcast %9 : vector<1x128xf32> to vector<16x128xf32>
    %11 = arith.subf %5, %10 : vector<16x128xf32>
    %12 = arith.mulf %11, %11 : vector<16x128xf32>
    %cst_6 = arith.constant dense<0.000000e+00> : vector<128xf32>
    %13 = vector.multi_reduction <add>, %12, %cst_6 [0] : vector<16x128xf32> to vector<128xf32>
    %14 = vector.shape_cast %13 : vector<128xf32> to vector<1x128xf32>
    %cst_7 = arith.constant 6.250000e-02 : f32
    %15 = vector.broadcast %cst_7 : f32 to vector<1x128xf32>
    %16 = arith.mulf %14, %15 : vector<1x128xf32>
    %c0_8 = arith.constant 0 : index
    %c0_9 = arith.constant 0 : index
    %17 = vector.load %arg4[%c0_8, %c0_9] : memref<1x128xf32, #tpu.memory_space<vmem>>, vector<1x128xf32>
    %cst_10 = arith.constant 9.99999974E-6 : f32
    %18 = vector.broadcast %cst_10 : f32 to vector<1x128xf32>
    %19 = arith.addf %16, %18 : vector<1x128xf32>
    %20 = math.rsqrt %19 : vector<1x128xf32>
    %21 = arith.mulf %17, %20 : vector<1x128xf32>
    %22 = vector.broadcast %21 : vector<1x128xf32> to vector<16x128xf32>
    %23 = arith.mulf %11, %22 : vector<16x128xf32>
    %c0_11 = arith.constant 0 : index
    %c0_12 = arith.constant 0 : index
    %24 = vector.load %arg5[%c0_11, %c0_12] : memref<1x128xf32, #tpu.memory_space<vmem>>, vector<1x128xf32>
    %25 = vector.broadcast %24 : vector<1x128xf32> to vector<16x128xf32>
    %26 = arith.addf %23, %25 : vector<16x128xf32>
    %cst_13 = arith.constant 0.000000e+00 : f32
    %27 = vector.broadcast %cst_13 : f32 to vector<16x128xf32>
    %28 = arith.maximumf %26, %27 : vector<16x128xf32>
    %c0_14 = arith.constant 0 : index
    %c0_15 = arith.constant 0 : index
    %29 = vector.load %arg8[%c0_14, %c0_15] : memref<16x128xf32, #tpu.memory_space<vmem>>, vector<16x128xf32>
    %30 = arith.truncf %28 : vector<16x128xf32> to vector<16x128xbf16>
    %c0_16 = arith.constant 0 : index
    %c0_17 = arith.constant 0 : index
    %31 = vector.load %arg6[%c0_16, %c0_17] : memref<128x128xbf16, #tpu.memory_space<vmem>>, vector<128x128xbf16>
    %cst_18 = arith.constant dense<0.000000e+00> : vector<16x128xf32>
    %32 = tpu.matmul %30, %31, %cst_18 {dimension_numbers = #tpu.dot_dimension_numbers<[1], [0], [0], [1], [0, 0, 1, 1], [], []>} : vector<16x128xbf16>, vector<128x128xbf16>, vector<16x128xf32> -> vector<16x128xf32>
    %33 = arith.addf %29, %32 : vector<16x128xf32>
    %c0_19 = arith.constant 0 : index
    %c0_20 = arith.constant 0 : index
    %34 = vector.load %arg8[%c0_19, %c0_20] : memref<16x128xf32, #tpu.memory_space<vmem>>, vector<16x128xf32>
    tpu.vector_store %arg8[%c0_19, %c0_20], %33 {strides = array<i32>} : memref<16x128xf32, #tpu.memory_space<vmem>>, vector<16x128xf32>,
    return
  }
  func.func @transform_0(%arg0: i32, %arg1: i32) -> (i32, i32) {
    %c0_i32 = arith.constant 0 : i32
    %c0_i32_0 = arith.constant 0 : i32
    %c0_i32_1 = arith.constant 0 : i32
    return %c0_i32, %c0_i32_0 : i32, i32
  }
  func.func @transform_1(%arg0: i32, %arg1: i32) -> (i32, i32) {
    %c0_i32 = arith.constant 0 : i32
    %c0_i32_0 = arith.constant 0 : i32
    return %c0_i32, %arg1 : i32, i32
  }
  func.func @transform_2(%arg0: i32, %arg1: i32) -> (i32, i32) {
    %c0_i32 = arith.constant 0 : i32
    %c0_i32_0 = arith.constant 0 : i32
    return %c0_i32, %arg1 : i32, i32
  }
  func.func @transform_3(%arg0: i32, %arg1: i32) -> (i32, i32) {
    %c0_i32 = arith.constant 0 : i32
    %c0_i32_0 = arith.constant 0 : i32
    return %c0_i32, %arg1 : i32, i32
  }
  func.func @transform_4(%arg0: i32, %arg1: i32) -> (i32, i32) {
    %c0_i32 = arith.constant 0 : i32
    return %arg1, %arg0 : i32, i32
  }
  func.func @transform_5(%arg0: i32, %arg1: i32) -> (i32, i32) {
    %c0_i32 = arith.constant 0 : i32
    %c0_i32_0 = arith.constant 0 : i32
    return %c0_i32, %arg0 : i32, i32
  }
  func.func @transform_6(%arg0: i32, %arg1: i32) -> (i32, i32) {
    %c0_i32 = arith.constant 0 : i32
    %c0_i32_0 = arith.constant 0 : i32
    return %c0_i32, %arg0 : i32, i32
  }
}

</mosaic_0001>

<bundles_post_ra>
// kernel: tpu_custom_call.1
= control target key start
LH: loop header
LB: loop body
LE: loop exit
PB: predicated region body
PF: predicated region fallthrough
CT: control target
= control target key end

     0   :  { %s1820_s0 = inlined_call_operand.hbm [shape: f32[16,128], index: 0, kind: input, shape index: {}]   ;;  %s1821_s1 = inlined_call_operand.hbm [shape: bf16[128,256], index: 1, kind: input, shape index: {}]   ;;  %s1822_s2 = inlined_call_operand.vmem [shape: f32[1,256], index: 2, kind: input, shape index: {}]   ;;  %s1823_s3 = inlined_call_operand.vmem [shape: f32[1,256], index: 3, kind: input, shape index: {}]   ;;  %s1824_s4 = inlined_call_operand.hbm [shape: bf16[256,256], index: 4, kind: input, shape index: {}]   ;;  %s1825_s5 = inlined_call_operand.vmem [shape: f32[1,256], index: 5, kind: input, shape index: {}]   ;;  %s1826_s6 = inlined_call_operand.hbm [shape: f32[16,256], index: 6, kind: output, shape index: {}]  }
   0x1   :  { %1850 = sst [smem:[#allocation22_spill]] %s1820_s0 }
   0x2   :  { %1851 = sst [smem:[#allocation23_spill]] %s1821_s1 }
   0x3   :  { %1852 = sst [smem:[#allocation24_spill]] %s1822_s2 }
   0x4   :  { %1853 = sst [smem:[#allocation25_spill]] %s1823_s3 }
   0x5   :  { %1854 = sst [smem:[#allocation26_spill]] %s1825_s5 }
   0x6   :  { %1855 = sst [smem:[#allocation27_spill]] %s1826_s6 }
   0x7   :  { %11 = vsyncpa [#allocation4], 0 }
   0x8   :  { %12 = vsyncpa [#allocation7], 0 }
   0x9   :  { %14 = vsyncpa [#allocation7 + $0x1], 0 }
   0xa   :  { %15 = vsyncpa [#allocation5], 0 }
   0xb   :  { %17 = vsyncpa [#allocation5 + $0x1], 0  ;;  %s1376_s21 = smov 0   ;;  %s1378_s22 = smov 0  }
   0xc   :  { %s1380_s23 = smov 0   ;;  %s1382_s24 = smov 0  }
   0xd   :  { %s1384_s25 = smov 0   ;;  %s1386_s26 = smov 0  }
   0xe   :  { %s1388_s27 = smov 0   ;;  %s1390_s28 = smov 0  }
   0xf   :  { %s1392_s29 = smov 0   ;;  %s1394_s30 = smov 0  }
  0x10   :  { %s1396_s7 = smov 0   ;;  %s1398_s8 = smov 0  }
  0x11   :  { %s1400_s9 = smov 0   ;;  %s1402_s10 = smov 0  }
  0x12 LB: > { %1856 = sst [smem:[#allocation14_spill]] %s1274_s21  ;;  %s32_s11 = sadd.s32 1, %s1318_s8  ;;  %s1326_s10 = sphi %s1402_s10, %s1921_s10   ;;  %s1322_s9 = sphi %s1400_s9, %s1920_s9   ;;  %s1318_s8 = sphi %s1398_s8, %s1919_s8   ;;  %s1314_s7 = sphi %s1396_s7, %s1918_s7   ;;  %s1310_s30 = sphi %s1394_s30, %s1917_s30   ;;  %s1306_s29 = sphi %s1392_s29, %s1906_s29   ;;  %s1302_s28 = sphi %s1390_s28, %s1916_s28   ;;  %s1298_s27 = sphi %s1388_s27, %s1915_s27   ;;  %s1294_s26 = sphi %s1386_s26, %s1914_s26   ;;  %s1290_s25 = sphi %s1384_s25, %s1913_s25   ;;  %s1286_s24 = sphi %s1382_s24, %s1912_s24   ;;  %s1282_s23 = sphi %s1380_s23, %s1911_s23   ;;  %s1278_s22 = sphi %s1378_s22, %s1910_s22   ;;  %s1274_s21 = sphi %s1376_s21, %s1909_s21  }
  0x13   : > { %1857 = sst [smem:[#allocation15_spill]] %s1306_s29  ;;  %s63_s12 = sadd.s32 1, %s1306_s29 }
  0x14   : > { %1858 = sst [smem:[#allocation16_spill]] %s1314_s7  ;;  %p1448_p0 = scmp.ge.s32.totalorder %s32_s11, 2 }
  0x15   : > { %1859 = sst [smem:[#allocation17_spill]] %s1326_s10  ;;  %p70_p1 = scmp.ne.s32.totalorder %s1306_s29, %s1302_s28 }
  0x16   : > { %s1860_s13 = scalar_select %p1448_p0, 1, 0 }
  0x17   : > { %p1830_p2 = scmp.eq.s32.totalorder %s1326_s10, 0  ;;  %s1923_s11 = smov (%p1448_p0, %s32_s11), 0 }
  0x18   : > { %1861 = sst [smem:[#allocation18_spill]] %s1923_s11  ;;  %s1463_s14 = ssub.s32 %s1318_s8, %s1923_s11 }
  0x19   : > { %p72_p3 = por %p1830_p2, %p70_p1  ;;  %p1829_p4 = scmp.lt.s32.totalorder %s1326_s10, 4 }
  0x1a   : > { %p61_p5 = scmp.eq.s32.totalorder %s1463_s14, 0  ;;  %s245_s15 = sand.u32 1, %s1326_s10  }
  0x1b   : > { %s247_s16 = sand.u32 1, %s1306_s29   ;;  %s823_s19 = sshll.u32 %s1318_s8, 6 }
  0x1c   : > { %s1470_s17 = scalar_select %p61_p5, %s1306_s29, %s63_s12  }
  0x1d   : > { %s822_s18 = sshll.u32 %s247_s16, 6  ;;  %s1863_s1 = sld [smem:[#allocation23_spill]] }
  0x1e   : > { %1862 = sst [smem:[#allocation19_spill]] %s1470_s17  ;;  %s249_s11 = scalar_lea.vmem [#allocation6], %s822_s18 }
  0x1f   : > { %s255_s3 = sshll.u32 %s249_s11, 4  ;;  %p1480_p6 = pnand %p1829_p4, %p72_p3  ;;  %s1484_s3 = int_to_ptr.vmem [resolvable:$true] %s255_s3 }
  0x20   : > { %s1486_s12 = scalar_lea.sflag [#allocation7], %s245_s15 }
  0x21   : > { %p1086_p8 = pneg %p1480_p6 }
  0x23   : > { %s1476_s5 = scalar_lea.hbm %s1863_s1, %s823_s19  ;;  %s1089_s18 = scalar_lea.hbm %s1863_s1, 2048 }
  0x24   : > { %s1084_s6 = scalar_lea.hbm %s1476_s5, 1024  ;;  %p1090_p11 = scmp.lt.u32.totalorder %s1476_s5, %s1863_s1 }
  0x25   : > { %p1085_p7 = scmp.ne.s32.totalorder %s1476_s5, %s1084_s6  ;;  %p1091_p12 = scmp.lt.u32.totalorder %s1089_s18, %s1084_s6 }
  0x26   : > { %p1093_p1 = scmp.lt.u32.totalorder %s1084_s6, %s1476_s5 }
  0x27   : > { %p1087_p9 = pnand %p1086_p8, %p1085_p7  ;;  %p1092_p13 = por %p1091_p12, %p1090_p11 }
  0x29   : > { %p1088_p10 = pneg %p1087_p9  ;;  %p1094_p3 = por %p1093_p1, %p1092_p13 }
  0x2b   : > { %p1095_p5 = pnand %p1094_p3, %p1088_p10 }
  0x2d   : > { %1098 = shalt.err (!%p1095_p5)
}
  0x2e   : > { %s1099_s15 = scalar_lea.vmem %s1484_s3, 1024  ;;  %s1328_s11 = smov [#allocation6]  }
  0x2f   : > { %p1100_p7 = scmp.ne.s32.totalorder %s1484_s3, %s1099_s15  ;;  %s1104_s16 = sshll.u32 %s1328_s11, 4  ;;  %s1105_s16 = int_to_ptr.vmem [resolvable:$false] %s1104_s16 }
  0x30   : > { %s1106_s19 = scalar_lea.vmem %s1105_s16, 2048  ;;  %p1107_p2 = scmp.lt.s32.totalorder %s1484_s3, %s1105_s16 }
  0x31   : > { %p1102_p9 = pnand %p1100_p7, %p1086_p8  ;;  %p1108_p11 = scmp.lt.s32.totalorder %s1106_s19, %s1099_s15 }
  0x33   : > { %p1103_p4 = pneg %p1102_p9  ;;  %p1109_p12 = por %p1108_p11, %p1107_p2 }
  0x35   : > { %p1110_p13 = pnand %p1109_p12, %p1103_p4 }
  0x37   : > { %1113 = shalt.err (!%p1110_p13)
}
  0x38   : > { %s1834_s6 = smov 128   ;;  %s1831_s18 = smov 64  }
  0x39   : > { %s1832_s20 = smov 4   ;;  %s1518_s15 = sadd.s32 4294967295, %s1326_s10  }
  0x3a   : > { %932 = dma.hbm_to_vmem [thread:$0]  (!%p1480_p6), %s1476_s5, 1024, %s1484_s3, %s1486_s12, %s1834_s6, %s1831_s18, %s1832_s20  }
  0x3b   : > { %p76_p2 = scmp.ne.s32.totalorder %s1302_s28, %s1298_s27  ;;  %p1833_p4 = scmp.eq.s32.totalorder %s1518_s15, 0 }
  0x3c   : > { %s818_s11 = sadd.s32 4294967294, %s1326_s10   ;;  %p150_p8 = scmp.ne.s32.totalorder %s1294_s26, %s1290_s25 }
  0x3d   : > { %p1528_p10 = por %p1833_p4, %p76_p2  ;;  %p156_p1 = scmp.ne.s32.totalorder %s1290_s25, %s1286_s24 }
  0x3e   : > { %p1866_p3 = scmp.eq.s32.totalorder %s1326_s10, 0  ;;  %p205_p7 = scmp.ne.s32.totalorder %s1282_s23, %s1278_s22 }
  0x3f   : > { %s1865_s16 = scalar_select %p1528_p10, 1, 0 }
  0x40   : > { %p1537_p6 = por %p150_p8, %p1866_p3  ;;  %p1543_p5 = por %p156_p1, %p1833_p4 }
  0x41   : > { %p206_p9 = scmp.eq.s32.totalorder %s1518_s15, 3  ;;  %p211_p11 = scmp.ne.s32.totalorder %s1278_s22, %s1274_s21 }
  0x42   : > { %s1868_s5 = scalar_select %p1543_p5, 1, 0 }
  0x43   : > { %p212_p12 = scmp.eq.s32.totalorder %s818_s11, 3  ;;  %p819_p13 = scmp.ge.s32.totalorder %s1326_s10, 1 }
  0x44   : > { %p1553_p2 = por %p206_p9, %p205_p7  ;;  %p219_p8 = scmp.lt.s32.totalorder %s1326_s10, 5 }
  0x45   : > { %p1558_p3 = por %p212_p12, %p211_p11  ;;  %s1332_s18 = smov [#allocation3]  }
  0x46   : > { %s1869_s24 = scalar_select %p1553_p2, 1, 0 }
  0x47   : > { %s1871_s27 = scalar_select %p1558_p3, 1, 0 }
  0x48   : > { %1870 = sst [smem:[#allocation20_spill]] %s1869_s24  ;;  %p1562_p1 = pnand %p819_p13, %p219_p8 }
  0x49   : > { %1872 = sst [smem:[#allocation21_spill]] %s1871_s27  ;;  %s231_s20 = sshll.u32 %s1332_s18, 4  ;;  %s232_s20 = int_to_ptr.vmem [resolvable:$true] %s231_s20 }
  0x4a   : > { %s1873_s19 = scalar_select %p1562_p1, 1, 0 }
  0x4b   : > { %p925_p4 = pneg %p1562_p1  ;;  %p1874_p7 = scmp.lt.s32.totalorder %s1326_s10, 4 }
  0x4c   : > { %p1876_p11 = scmp.eq.s32.totalorder %s1518_s15, 0  ;;  %s35_s6 = sadd.s32 1, %s1322_s9 }
  0x4d   : > { %p1572_p9 = pnand %p1874_p7, %p1537_p6  ;;  %s279_s1 = sand.u32 1, %s1294_s26  }
  0x4e   : > { %p1578_p12 = pnand %p925_p4, %p1876_p11  ;;  %s1878_s0 = sld [smem:[#allocation22_spill]] }
  0x4f   : > { %s1875_s11 = scalar_select %p1572_p9, 1, 0 }
  0x50   : > { %p1116_p6 = pneg %p1578_p12 }
  0x54   : > { %s1114_s18 = scalar_lea.hbm %s1878_s0, 256 }
  0x55   : > { %p1115_p13 = scmp.ne.s32.totalorder %s1878_s0, %s1114_s18  ;;  %p1121_p4 = scmp.lt.u32.totalorder %s1114_s18, %s1878_s0 }
  0x57   : > { %p1117_p8 = pnand %p1116_p6, %p1115_p13 }
  0x59   : > { %p1118_p7 = pneg %p1117_p8 }
  0x5b   : > { %p1123_p11 = pnand %p1121_p4, %p1118_p7 }
  0x5d   : > { %1126 = shalt.err (!%p1123_p11)
}
  0x5e   : > { %s1127_s24 = scalar_lea.vmem %s232_s20, 256  ;;  %p1135_p10 = scmp.lt.s32.totalorder %s232_s20, %s232_s20 }
  0x5f   : > { %p1128_p3 = scmp.ne.s32.totalorder %s232_s20, %s1127_s24  ;;  %p1136_p1 = scmp.lt.s32.totalorder %s1127_s24, %s1127_s24 }
  0x61   : > { %p1130_p2 = pnand %p1128_p3, %p1116_p6  ;;  %p1137_p9 = por %p1136_p1, %p1135_p10 }
  0x63   : > { %p1131_p5 = pneg %p1130_p2 }
  0x65   : > { %p1138_p0 = pnand %p1137_p9, %p1131_p5 }
  0x67   : > { %1141 = shalt.err (!%p1138_p0)
}
  0x68   : > { %s1333_s21 = smov 8   ;;  %s1879_s29 = smov 128  }
  0x69   : > { %928 = dma.hbm_to_vmem [thread:$0]  (!%p1578_p12), %s1878_s0, 256, %s232_s20, [#allocation4], %s1879_s29, %s1879_s29, %s1333_s21  }
  0x6a   : > { %p1880_p2 = scmp.ne.s32.totalorder %s1860_s13, 0  ;;  %s824_s10 = sshll.u32 %s279_s1, 6 }
  0x6b   : > { %s856_s2 = sshll.u32 %s1318_s8, 5  ;;  %s281_s18 = scalar_lea.vmem [#allocation8], %s824_s10 }
  0x6c   : > { %s1925_s6 = smov (!%p1880_p2, %s35_s6), %s1322_s9  ;;  %s287_s24 = sadd.s32 %s1322_s9, %s856_s2 }
  0x6d   : > { %p37_p0 = scmp.ge.s32.totalorder %s1925_s6, 2  ;;  %s290_s3 = sshll.u32 %s281_s18, 4  ;;  %s1612_s3 = int_to_ptr.vmem [resolvable:$true] %s290_s3 }
  0x6e   : > { %s195_s17 = sadd.s32 1, %s1282_s23  ;;  %s827_s27 = sshll.u32 %s287_s24, 6 }
  0x6f   : > { %s1927_s6 = smov (%p37_p0, %s1925_s6), 0  ;;  %s1618_s21 = scalar_lea.hbm %s1824_s4, %s827_s27 }
  0x70   : > { %s139_s7 = ssub.s32 %s1322_s9, %s1927_s6  ;;  %s1881_s2 = sadd.s32 1, %s1294_s26 }
  0x71   : > { %s140_s13 = sor.u32 %s139_s7, %s1463_s14  ;;  %p193_p10 = scmp.eq.s32.totalorder %s139_s7, 0 }
  0x72   : > { %p141_p5 = scmp.eq.s32.totalorder %s140_s13, 0  ;;  %s1142_s24 = scalar_lea.hbm %s1618_s21, 1024 }
  0x73   : > { %s1621_s10 = scalar_select %p193_p10, %s1282_s23, %s195_s17  }
  0x74   : > { %s1626_s18 = scalar_select %p141_p5, %s1294_s26, %s1881_s2  }
  0x75   : > { %p1143_p3 = scmp.ne.s32.totalorder %s1618_s21, %s1142_s24  ;;  %p1882_p1 = scmp.ne.s32.totalorder %s1875_s11, 0 }
  0x76   : > { %s1147_s27 = scalar_lea.hbm %s1824_s4, 4096  ;;  %p1148_p6 = scmp.lt.u32.totalorder %s1618_s21, %s1824_s4 }
  0x77   : > { %p1144_p9 = pneg %p1882_p1  ;;  %p1149_p8 = scmp.lt.u32.totalorder %s1147_s27, %s1142_s24 }
  0x78   : > { %p1151_p4 = scmp.lt.u32.totalorder %s1142_s24, %s1618_s21 }
  0x79   : > { %p1145_p12 = pnand %p1144_p9, %p1143_p3  ;;  %p1150_p7 = por %p1149_p8, %p1148_p6 }
  0x7b   : > { %p1146_p13 = pneg %p1145_p12  ;;  %p1152_p11 = por %p1151_p4, %p1150_p7 }
  0x7d   : > { %p1153_p2 = pnand %p1152_p11, %p1146_p13 }
  0x7f   : > { %1156 = shalt.err (!%p1153_p2)
}
  0x80   : > { %s1157_s17 = scalar_lea.vmem %s1612_s3, 1024  ;;  %s1334_s20 = smov [#allocation8]  }
  0x81   : > { %p1158_p0 = scmp.ne.s32.totalorder %s1612_s3, %s1157_s17  ;;  %s1162_s2 = sshll.u32 %s1334_s20, 4  ;;  %s1163_s2 = int_to_ptr.vmem [resolvable:$false] %s1162_s2 }
  0x82   : > { %s1164_s7 = scalar_lea.vmem %s1163_s2, 2048  ;;  %p1165_p3 = scmp.lt.s32.totalorder %s1612_s3, %s1163_s2 }
  0x83   : > { %p1160_p10 = pnand %p1158_p0, %p1144_p9  ;;  %p1166_p12 = scmp.lt.s32.totalorder %s1164_s7, %s1157_s17 }
  0x85   : > { %p1161_p5 = pneg %p1160_p10  ;;  %p1167_p6 = por %p1166_p12, %p1165_p3 }
  0x87   : > { %p1168_p8 = pnand %p1167_p6, %p1161_p5 }
  0x89   : > { %1171 = shalt.err (!%p1168_p8)
}
  0x8a   : > { %s1883_s24 = smov 4   ;;  %s1884_s14 = smov 64  }
  0x8b   : > { %935 = dma.hbm_to_vmem [thread:$0]  (!%p1882_p1), %s1618_s21, 1024, %s1612_s3, %s1486_s12, %s1879_s29, %s1884_s14, %s1883_s24  }
  0x8c   : > { %p1885_p9 = scmp.ne.s32.totalorder %s1873_s19, 0 }
  0x8d   : > { %p1886_p13 = scmp.eq.s32.totalorder (!%p1885_p9), %s1518_s15, 0 }
  0x8e   : > { %308 = sbr.rel (%p1885_p9) target bundleno = 713 (0x2c9), region = 44 }
  0x95   : > { %1257 = dma.done.wait (%p1886_p13), [#allocation4], 256   ;;  %p1887_p7 = pmov %p1886_p13 }
  0x96   : > { %s314_s11 = sand.u32 1, %s1518_s15   ;;  %s316_s27 = sand.u32 1, %s1302_s28  }
  0x97   : > { %1259 = vsyncadd (%p1887_p7), [#allocation4], 4294967040  ;;  %s830_s13 = sshll.u32 %s316_s27, 6  ;;  %s315_s1 = scalar_lea.sflag [#allocation7], %s314_s11 }
  0x98   : > { %s1665_s17 = scalar_lea.vmem [#allocation6], %s830_s13  ;;  %p1888_p4 = scmp.ne.s32.totalorder %s1865_s16, 0 }
  0x9a   : > { %1261 = dma.done.wait (%p1888_p4), %s315_s1, 1024  }
  0x9b   : > { %1263 = vsyncadd (%p1888_p4), %s315_s1, 4294966272  ;;  %s325_s12 = sand.u32 1, %s1290_s25   ;;  %p1889_p1 = scmp.ne.s32.totalorder %s1868_s5, 0 }
  0x9c   : > { %s831_s19 = sshll.u32 %s325_s12, 6 }
  0x9d   : > { %s1672_s29 = scalar_lea.vmem [#allocation8], %s831_s19 }
  0x9e   : > { %1265 = dma.done.wait (%p1889_p1), %s315_s1, 1024  }
  0x9f   : > { %1267 = vsyncadd (%p1889_p1), %s315_s1, 4294966272  ;;  %s1890_s15 = sld [smem:[#allocation16_spill]]  ;;  %s367_s3 = sand.u32 1, %s1278_s22  }
  0xa0   : > { %p370_p11 = scmp.lt.s32.totalorder %s1310_s30, 1  ;;  %s832_s16 = sshll.u32 %s367_s3, 4 }
  0xa1   : > { %s1891_s5 = sld [smem:[#allocation24_spill]]  ;;  %s1892_s11 = sld [smem:[#allocation25_spill]] }
  0xa2   : > { %s1684_s21 = scalar_select %p370_p11, %s1310_s30, 1 }
  0xa3   : > { %s1893_s12 = sld [smem:[#allocation26_spill]]  ;;  %s1698_s0 = scalar_lea.vmem [#allocation9], %s832_s16 }
  0xa4   : > { %p833_p0 = scmp.ne.s32.totalorder %s1310_s30, 0 }
  0xa5   : > { %p377_p2 = scmp.lt.s32.totalorder %s1890_s15, 1  ;;  %v385_v0 = vld [vmem:[#allocation3] sm:$0xff] (!%p833_p0)  ;;  %v386_v1 = vld [vmem:[#allocation3 + $0x8] sm:$0xff] (!%p833_p0) }
  0xa6   : > { %384 = sbr.rel (%p833_p0) target bundleno = 173 (0xad), region = 60  ;;  %v387_v3 = vpack.c.bf16 (!%p833_p0), %v386_v1, %v385_v0 }
  0xa7   : > { %s1929_s15 = smov (!%p377_p2, %s1890_s15), 1  ;;  %s372_s7 = scalar_lea.vmem %s1891_s5, %s1684_s21 }
  0xa8   : > { %s375_s27 = scalar_lea.vmem %s1892_s11, %s1684_s21  ;;  %388 = vst [vmem:[#allocation2] sm:$0xff] (!%p833_p0), %v387_v3 }
  0xa9   : > { %s379_s19 = scalar_lea.vmem %s1893_s12, %s1929_s15 }
  0xaa   : > { %v834_v2 = vld [vmem:[%s379_s19] ss:$0 sm:$0xff] (!%p833_p0) }
  0xab   : > { %396 = vst [vmem:[%s1698_s0] sm:$0xff] (!%p833_p0), %v834_v2  ;;  %397 = vst [vmem:[%s1698_s0 + $0x8] sm:$0xff] (!%p833_p0), %v834_v2 }
  0xad PF: > { %v1066_v4 = vld [vmem:[%s1665_s17] sm:$0xff]   ;;  %v1335_v5 = vmov 0.0   ;;  %v1067_v6 = vld [vmem:[%s1665_s17 + $0x8] sm:$0xff]   ;;  %vm1336_vm0 = vmmov 0   ;;  %v1068_v7 = vld [vmem:[%s1665_s17 + $0x10] sm:$0xff]   ;;  %v529_v47 = vlaneseq  ;;  %s1895_s15 = sld [smem:[#allocation16_spill]] }
  0xae   : > { %875 = vmatprep.subr.bf16.mxu0 %v1335_v5  ;;  %895 = vmatprep.subr.bf16.mxu1 %v1335_v5  ;;  %v1069_v8 = vld [vmem:[%s1665_s17 + $0x18] sm:$0xff]   ;;  %v1070_v9 = vld [vmem:[%s1665_s17 + $0x20] sm:$0xff]   ;;  %v1071_v10 = vld [vmem:[%s1665_s17 + $0x28] sm:$0xff]   ;;  %s672_s24 = sshll.u32 %s1698_s0, 4  ;;  %s1898_s11 = sld [smem:[#allocation27_spill]]  ;;  %s1738_s24 = int_to_ptr.vmem [resolvable:$true] %s672_s24 }
  0xaf   : > { %876 = vmatpush3.bf16.msra.mxu0 %v1066_v4  ;;  %891 = vmatprep.mubr.msk.bf16.mxu0 %vm1336_vm0, %v1335_v5  ;;  %v1072_v11 = vld [vmem:[%s1665_s17 + $0x30] sm:$0xff]   ;;  %v1073_v12 = vld [vmem:[%s1665_s17 + $0x38] sm:$0xff]   ;;  %v398_v13 = vld [vmem:[#allocation2] sm:$0xff]  ;;  %v530_v48 = vshrl.u32 %v529_v47, 7  ;;  %s1744_s13 = scalar_lea.sflag [#allocation5], %s367_s3  ;;  %s1172_s1 = scalar_lea.vmem %s1738_s24, 256 }
  0xb0   : > { %877 = vmatprep.subr.bf16.mxu0 %v1335_v5  ;;  %911 = vmatprep.mubr.msk.bf16.mxu1 %vm1336_vm0, %v1335_v5  ;;  %v1074_v14 = vld [vmem:[%s1672_s29] sm:$0xff]   ;;  %v1075_v15 = vld [vmem:[%s1672_s29 + $0x8] sm:$0xff]   ;;  %v1076_v16 = vld [vmem:[%s1672_s29 + $0x10] sm:$0xff]   ;;  %p1173_p10 = scmp.ne.s32.totalorder %s1738_s24, %s1172_s1  ;;  %s1337_s12 = smov [#allocation9]  }
  0xb1   : > { %896 = vmatpush3.bf16.msra.mxu1 %v1074_v14  ;;  %v1077_v17 = vld [vmem:[%s1672_s29 + $0x18] sm:$0xff]   ;;  %v1078_v18 = vld [vmem:[%s1672_s29 + $0x20] sm:$0xff]   ;;  %v1079_v19 = vld [vmem:[%s1672_s29 + $0x28] sm:$0xff]   ;;  %v531_v50 = vsub.s32 0, %v530_v48  ;;  %s1176_s19 = sshll.u32 %s1337_s12, 4  ;;  %s1177_s19 = int_to_ptr.vmem [resolvable:$false] %s1176_s19 }
  0xb2   : > { %897 = vmatprep.subr.bf16.mxu1 %v1335_v5  ;;  %v1080_v20 = vld [vmem:[%s1672_s29 + $0x30] sm:$0xff]   ;;  %v1081_v21 = vld [vmem:[%s1672_s29 + $0x38] sm:$0xff]   ;;  %v524_v49 = vld [vmem:[%s372_s7] sm:$0x1]  ;;  %s1897_s7 = sld [smem:[#allocation20_spill]]  ;;  %s1178_s30 = scalar_lea.vmem %s1177_s19, 512 }
  0xb3   : > { %878 = vmatpush3.bf16.msra.mxu0 %v1067_v6  ;;  %v843_v54 = vld [vmem:[%s375_s27] ss:$0 sm:$0xff]  ;;  %v547_v62 = vld [vmem:[%s1698_s0] sm:$0xff]  ;;  %s853_s5 = sshll.u32 %s1895_s15, 7  ;;  %p1179_p6 = scmp.lt.s32.totalorder %s1738_s24, %s1177_s19 }
  0xb4   : > { %879 = vmatprep.subr.bf16.mxu0 %v1335_v5  ;;  %v548_v0 = vld [vmem:[%s1698_s0 + $0x8] sm:$0xff]  ;;  %s1736_s27 = scalar_lea.hbm %s1898_s11, %s853_s5  ;;  %p1180_p8 = scmp.lt.s32.totalorder %s1178_s30, %s1172_s1 }
  0xb5   : > { %898 = vmatpush3.bf16.msra.mxu1 %v1075_v15 }
  0xb6   : > { %899 = vmatprep.subr.bf16.mxu1 %v1335_v5  ;;  %p1181_p9 = por %p1180_p8, %p1179_p6 }
  0xb7   : > { %880 = vmatpush3.bf16.msra.mxu0 %v1068_v7 }
  0xb8   : > { %881 = vmatprep.subr.bf16.mxu0 %v1335_v5  ;;  %p1899_p5 = scmp.ne.s32.totalorder %s1897_s7, 0 }
  0xb9   : > { %900 = vmatpush3.bf16.msra.mxu1 %v1076_v16 }
  0xba   : > { %901 = vmatprep.subr.bf16.mxu1 %v1335_v5  ;;  %p1174_p3 = pnand %p1173_p10, %p1899_p5 }
  0xbb   : > { %882 = vmatpush3.bf16.msra.mxu0 %v1069_v8 }
  0xbc   : > { %883 = vmatprep.subr.bf16.mxu0 %v1335_v5  ;;  %p1175_p12 = pneg %p1174_p3 }
  0xbd   : > { %902 = vmatpush3.bf16.msra.mxu1 %v1077_v17 }
  0xbe   : > { %903 = vmatprep.subr.bf16.mxu1 %v1335_v5  ;;  %p1182_p13 = pnand %p1181_p9, %p1175_p12 }
  0xbf   : > { %884 = vmatpush3.bf16.msra.mxu0 %v1070_v9 }
  0xc0   : > { %885 = vmatprep.subr.bf16.mxu0 %v1335_v5 }
  0xc1   : > { %904 = vmatpush3.bf16.msra.mxu1 %v1078_v18 }
  0xc2   : > { %905 = vmatprep.subr.bf16.mxu1 %v1335_v5 }
  0xc3   : > { %886 = vmatpush3.bf16.msra.mxu0 %v1071_v10 }
  0xc4   : > { %887 = vmatprep.subr.bf16.mxu0 %v1335_v5 }
  0xc5   : > { %906 = vmatpush3.bf16.msra.mxu1 %v1079_v19 }
  0xc6   : > { %907 = vmatprep.subr.bf16.mxu1 %v1335_v5 }
  0xc7   : > { %888 = vmatpush3.bf16.msra.mxu0 %v1072_v11 }
  0xc8   : > { %889 = vmatprep.subr.bf16.mxu0 %v1335_v5 }
  0xc9   : > { %908 = vmatpush3.bf16.msra.mxu1 %v1080_v20 }
  0xca   : > { %909 = vmatprep.subr.bf16.mxu1 %v1335_v5 }
  0xcb   : > { %890 = vmatpush3.bf16.msra.mxu0 %v1073_v12 }
  0xcd   : > { %910 = vmatpush3.bf16.msra.mxu1 %v1081_v21 }
  0xce   : > { %892 = vmatmul.mubr.bf16.vlgmr.msra.gmra.mrb[0].mxu0 %v398_v13 }
 0x1a1   : > { %v497_v22 = vpop.f32.mrb[0].mxu0 }
 0x1a2   : > { %v893_v23 = vpop.f32.mrb[1].mxu0 }
 0x1a3   : > { %v500_v24 = vpop.f32.mrb[2].mxu0 }
 0x1a4   : > { %v504_v25 = vadd.f32 %v500_v24, %v497_v22  ;;  %v894_v26 = vpop.f32.mrb[3].mxu0 }
 0x1a6   : > { %v505_v27 = vrot.slane %v504_v25, 4 }
 0x1a8   : > { %v506_v28 = vadd.f32 %v505_v27, %v504_v25 }
 0x1aa   : > { %v507_v29 = vrot.slane %v506_v28, 2 }
 0x1ac   : > { %v508_v30 = vadd.f32 %v507_v29, %v506_v28 }
 0x1ae   : > { %v509_v31 = vrot.slane %v508_v30, 1 }
 0x1b0   : > { %v510_v32 = vadd.f32 %v509_v31, %v508_v30 }
 0x1b2   : > { %v511_v33 = vmul.f32 0.0625, %v510_v32 }
 0x1b4   : > { %v512_v34 = vsub.f32 %v497_v22, %v511_v33  ;;  %v513_v35 = vsub.f32 %v500_v24, %v511_v33 }
 0x1b6   : > { %v514_v36 = vmul.f32 %v512_v34, %v512_v34  ;;  %v515_v37 = vmul.f32 %v513_v35, %v513_v35 }
 0x1b8   : > { %v516_v38 = vadd.f32 %v515_v37, %v514_v36 }
 0x1ba   : > { %v517_v39 = vrot.slane %v516_v38, 4 }
 0x1bc   : > { %v518_v40 = vadd.f32 %v517_v39, %v516_v38 }
 0x1be   : > { %v519_v41 = vrot.slane %v518_v40, 2 }
 0x1c0   : > { %v520_v42 = vadd.f32 %v519_v41, %v518_v40 }
 0x1c2   : > { %v521_v43 = vrot.slane %v520_v42, 1 }
 0x1c4   : > { %v522_v44 = vadd.f32 %v521_v43, %v520_v42 }
 0x1c6   : > { %v523_v45 = vmul.f32 0.0625, %v522_v44 }
 0x1c8   : > { %v525_v46 = vadd.f32 1e-05, %v523_v45 }
 0x1ca   : > { %1082 = vrsqrt.f32 %v525_v46 }
 0x1d4   : > { %v1083_v51 = vpop.eup %1082 }
 0x1d5   : > { %v527_v52 = vmul.f32 %v1083_v51, %v524_v49 }
 0x1d7   : > { %v532_v53 = vrot.slane %v527_v52, %v531_v50 }
 0x1d9   : > { %v534_v55 = vmul.f32 %v532_v53, %v512_v34  ;;  %v535_v56 = vmul.f32 %v532_v53, %v513_v35 }
 0x1db   : > { %v544_v57 = vadd.f32 %v843_v54, %v535_v56  ;;  %v543_v58 = vadd.f32 %v843_v54, %v534_v55 }
 0x1dd   : > { %v545_v59 = vmax.f32 %v543_v58, 0.0  ;;  %v546_v60 = vmax.f32 %v544_v57, 0.0 }
 0x1df   : > { %v549_v61 = vpack.c.bf16 %v546_v60, %v545_v59 }
 0x1e1   : > { %912 = vmatmul.mubr.bf16.vlgmr.msra.gmra.mrb[0].mxu1 %v549_v61 }
 0x2b4   : > { %v648_v63 = vpop.f32.mrb[0].mxu1 }
 0x2b5   : > { %v655_v1 = vadd.f32 %v648_v63, %v547_v62  ;;  %v913_v2 = vpop.f32.mrb[1].mxu1 }
 0x2b6   : > { %v651_v3 = vpop.f32.mrb[2].mxu1 }
 0x2b7   : > { %657 = vst [vmem:[%s1698_s0] sm:$0xff] %v655_v1  ;;  %v656_v4 = vadd.f32 %v651_v3, %v548_v0  ;;  %v914_v5 = vpop.f32.mrb[3].mxu1 }
 0x2b9   : > { %658 = vst [vmem:[%s1698_s0 + $0x8] sm:$0xff] %v656_v4 }
 0x2ba   : > { %1185 = shalt.err (!%p1182_p13)
}
 0x2bb   : > { %s1186_s0 = scalar_lea.hbm %s1736_s27, 256  ;;  %s1190_s29 = scalar_lea.hbm %s1898_s11, 512 }
 0x2bc   : > { %p1187_p7 = scmp.ne.s32.totalorder %s1736_s27, %s1186_s0  ;;  %p1191_p11 = scmp.lt.u32.totalorder %s1736_s27, %s1898_s11 }
 0x2bd   : > { %p1192_p2 = scmp.lt.u32.totalorder %s1190_s29, %s1186_s0  ;;  %p1194_p10 = scmp.lt.u32.totalorder %s1186_s0, %s1736_s27 }
 0x2be   : > { %p1188_p4 = pnand %p1187_p7, %p1899_p5 }
 0x2bf   : > { %p1193_p0 = por %p1192_p2, %p1191_p11 }
 0x2c0   : > { %p1189_p1 = pneg %p1188_p4 }
 0x2c1   : > { %p1195_p3 = por %p1194_p10, %p1193_p0 }
 0x2c3   : > { %p1196_p12 = pnand %p1195_p3, %p1189_p1 }
 0x2c5   : > { %1199 = shalt.err (!%p1196_p12)
}
 0x2c6   : > { %s1338_s20 = smov 128   ;;  %s1339_s2 = smov 256  }
 0x2c7   : > { %s1340_s5 = smov 8  }
 0x2c8   : > { %923 = dma.vmem_to_hbm [thread:$0]  (%p1899_p5), %s1738_s24, 256, %s1736_s27, %s1744_s13, %s1338_s20, %s1339_s2, %s1340_s5  }
 0x2c9 PF: > { %s1900_s21 = sld [smem:[#allocation17_spill]]  ;;  %s1901_s14 = sld [smem:[#allocation14_spill]] }
 0x2ca   : > { %s1902_s1 = sld [smem:[#allocation21_spill]] }
 0x2cf   : > { %p943_p6 = scmp.ge.s32.totalorder %s1900_s21, 2  ;;  %s687_s12 = sand.u32 1, %s1901_s14  }
 0x2d0   : > { %p1903_p8 = scmp.ne.s32.totalorder %s1902_s1, 0  ;;  %s688_s19 = scalar_lea.sflag [#allocation5], %s687_s12 }
 0x2d2   : > { %p937_p9 = pnand %p943_p6, %p1903_p8 }
 0x2d4   : > { %1269 = dma.done.wait (!%p937_p9), %s688_s19, 256  }
 0x2d5   : > { %1271 = vsyncadd (!%p937_p9), %s688_s19, 4294967040  ;;  %s23_s0 = sadd.s32 1, %s1900_s21   ;;  %s1905_s7 = sld [smem:[#allocation15_spill]] }
 0x2d6   : > { %p1773_p13 = scmp.ge.s32.totalorder %s23_s0, 6   ;;  %s1906_s29 = sld [smem:[#allocation19_spill]] }
 0x2d7   : > { %s1907_s13 = sld [smem:[#allocation18_spill]]  ;;  %s1909_s21 = smov %s1278_s22 }
 0x2d8   : > { %s1910_s22 = smov %s1282_s23  ;;  %s1911_s23 = smov %s1621_s10 }
 0x2d9   : > { %s1912_s24 = smov %s1290_s25  ;;  %s1913_s25 = smov %s1294_s26 }
 0x2da   : > { %s1914_s26 = smov %s1626_s18  ;;  %s1915_s27 = smov %s1302_s28 }
 0x2db   : > { %s1916_s28 = smov %s1905_s7  ;;  %s1917_s30 = smov %s1318_s8 }
 0x2dc   : > { %s1918_s7 = smov %s1322_s9  ;;  %s1920_s9 = smov %s1927_s6 }
 0x2dd   : > { %s1919_s8 = smov %s1907_s13  ;;  %s1921_s10 = smov %s23_s0 }
 0x2de   :  { %22 = sbr.rel (!%p1773_p13) target bundleno = 18 (0x12), region = 118 }
 0x2e5   :  { %693 = vsyncpa [#allocation4], 1 }
 0x2e6   :  { %695 = vsyncpa [#allocation4 + $0x1], 1 }
 0x2e7   :  { %696 = vsyncpa [#allocation7], 1 }
 0x2e8   :  { %698 = vsyncpa [#allocation7 + $0x1], 1 }
 0x2e9   :  { %699 = vsyncpa [#allocation5], 1 }
 0x2ea   :  { %701 = vsyncpa [#allocation5 + $0x1], 1 }

</bundles_post_ra>
